<compile_context>
chip_gen: v7x
topology: tpu7x:2x2x1
jax: 0.10.0
libtpu: 0.0.40
codegen_flags: <defaults>
</compile_context>

<pallas_src>
import jax
import jax.numpy as jnp
from jax.experimental import pallas as pl
from jax.experimental.pallas import tpu as pltpu


# ----------------------------- Pallas kernel -------------------------------

def _dfa_step_kernel(inv_t_ref, s0_ref, trans_ref, accmask_ref,
                     logp_ref, p_ref, accept_ref):
    """Fused next-state aggregation + accepting + calibrated (log_)softmax.

    inv_t_ref   : SMEM (1,)            1 / temperature
    s0_ref      : VMEM [Bblk, S]       prev-state probabilities
    trans_ref   : VMEM [Bblk, S*S]     flattened transition guard probs,
                                       column i*S + j  =  P(guard(s_i -> s_j))
    accmask_ref : VMEM [1, S]          1.0 on accepting states
    outputs     : log_next [Bblk,S], next [Bblk,S], accepting [Bblk,1]
    """
    nstates = s0_ref.shape[1]

    # u[b, s1] = sum_{s0} prev[b, s0] * P(guard(s0 -> s1) | constraints)[b]
    # Static unroll over the (tiny) number of prev states; every op is a
    # lane-dense 2-D VPU op with static lane slices.
    u = jnp.zeros(s0_ref.shape, dtype=jnp.float32)
    for i in range(nstates):
        u = u + s0_ref[:, i:i + 1] * trans_ref[:, i * nstates:(i + 1) * nstates]

    # accepting() = OR over accepting next states; DFA transitions are
    # mutually exclusive, so the OR reduces to a sum in the prob semiring.
    accept_ref[...] = jnp.sum(u * accmask_ref[...], axis=1, keepdims=True)

    # Temperature-calibrated softmax and log_softmax sharing one max/logsumexp.
    inv_t = inv_t_ref[0]
    logits = jnp.log(u) * inv_t
    m = jnp.max(logits, axis=1, keepdims=True)
    shifted = logits - m
    ex = jnp.exp(shifted)
    denom = jnp.sum(ex, axis=1, keepdims=True)
    p_ref[...] = ex / denom
    logp_ref[...] = shifted - jnp.log(denom)


def dfa_step(s0, trans_flat, acc_mask, inv_t, *, block_b=8):
    """One fused pallas_call for the whole DFAScallop forward math."""
    B, S = s0.shape
    if B % block_b != 0:
        block_b = B
    grid = (B // block_b,)

    out_shape = (
        jax.ShapeDtypeStruct((B, S), jnp.float32),   # log_next_state
        jax.ShapeDtypeStruct((B, S), jnp.float32),   # next_state
        jax.ShapeDtypeStruct((B, 1), jnp.float32),   # accepting
    )

    return pl.pallas_call(
        _dfa_step_kernel,
        out_shape=out_shape,
        grid=grid,
        in_specs=[
            pl.BlockSpec(memory_space=pltpu.MemorySpace.SMEM),       # inv_t (1,)
            pl.BlockSpec((block_b, S), lambda b: (b, 0)),            # s0
            pl.BlockSpec((block_b, S * S), lambda b: (b, 0)),        # trans_flat
            pl.BlockSpec((1, S), lambda b: (0, 0)),                  # acc_mask
        ],
        out_specs=(
            pl.BlockSpec((block_b, S), lambda b: (b, 0)),
            pl.BlockSpec((block_b, S), lambda b: (b, 0)),
            pl.BlockSpec((block_b, 1), lambda b: (b, 0)),
        ),
        compiler_params=pltpu.CompilerParams(
            dimension_semantics=("parallel",)),
    )(inv_t, s0, trans_flat, acc_mask)


# ------------------------- guard-probability helper -------------------------

def _guard_prob(guard, constraints, batch):
    """Probability of a tiny propositional guard under independent props.

    Supports 'True', 'False', literal 'p', negation '~p', and '&'-conjunctions
    of literals. Built with plain JAX on purpose (fused by XLA); wrapping these
    trivial elementwise ops in Pallas was the main inefficiency previously.
    """
    guard = guard.strip()
    if guard == "True":
        return jnp.ones((batch,), jnp.float32)
    if guard == "False":
        return jnp.zeros((batch,), jnp.float32)
    prob = jnp.ones((batch,), jnp.float32)
    for lit in guard.split("&"):
        lit = lit.strip()
        if lit.startswith("~"):
            prob = prob * (1.0 - constraints[lit[1:].strip()])
        else:
            prob = prob * constraints[lit]
    return prob


# ------------------------------ module port ---------------------------------

class DFAScallop:
    """JAX/Pallas port of the PyTorch DFAScallop module (forward pass)."""

    def __init__(self, propositions, automaton, provenance="difftopkproofs",
                 train_k=3, test_k=3, calibrate=True, eps=1e-8):
        del provenance, train_k, test_k  # engine-specific; see TODO(synk) above
        self.propositions = list(propositions)
        self.states = list(automaton["states"])
        self.eps = float(eps)
        self.calibrate = calibrate
        self.accepting = list(automaton["accepting"])

        self.transitions = []  # (prev_idx, next_idx, guard_str)
        for s0, v in automaton.items():
            if isinstance(s0, int):
                for s1, guard in v.items():
                    self.transitions.append(
                        (self.states.index(s0), self.states.index(s1), guard))

        acc = jnp.zeros((1, len(self.states)), jnp.float32)
        for a in self.accepting:
            acc = acc.at[0, self.states.index(a)].set(1.0)
        self.acc_mask = acc

        # torch.nn.Parameter(torch.ones(1)) equivalent
        self.temperature_logit = jnp.ones((1,), jnp.float32)

    def _transition_tensor(self, constraints, batch):
        """Per-batch transition guard probabilities T[b, s0, s1]."""
        S = len(self.states)
        T = jnp.zeros((batch, S, S), jnp.float32)
        for i, j, guard in self.transitions:
            T = T.at[:, i, j].set(_guard_prob(guard, constraints, batch))
        return T

    def forward(self, log_s0, s0, constraints):
        del log_s0  # unused by the reference forward as well
        batch, S = s0.shape

        # Engine inputs built in plain JAX (trivially fusible); flattened to a
        # lane-dense 2-D layout for the kernel.
        trans = self._transition_tensor(constraints, batch)
        trans_flat = trans.reshape(batch, S * S).astype(jnp.float32)

        if self.calibrate:
            t = jax.nn.relu(self.temperature_logit) + self.eps
        else:
            t = jnp.ones((1,), jnp.float32)
        inv_t = (1.0 / t).astype(jnp.float32)

        log_next, next_state, accepting = dfa_step(
            s0.astype(jnp.float32), trans_flat, self.acc_mask, inv_t)
        return log_next, next_state, accepting[:, 0]

    __call__ = forward


# --------------------------------- main --------------------------------------

if __name__ == "__main__":
    key = jax.random.PRNGKey(0)
    kp, ka, kb = jax.random.split(key, 3)

    B = 16  # batch: two grid steps of 8 sublanes each
    propositions = ["a", "b"]
    automaton = {
        "states": (0, 1, 2, 3),
        "accepting": [3],
        0: {0: "~a", 1: "a"},
        1: {1: "~b", 2: "b"},
        2: {2: "~a", 3: "a"},
        3: {3: "True"},
    }
    S = len(automaton["states"])

    module = DFAScallop(propositions, automaton, calibrate=True, eps=1e-8)

    # Deterministic inputs: prev-state distribution + proposition probabilities.
    s0 = jax.nn.softmax(
        jax.random.normal(kp, (B, S), dtype=jnp.float32), axis=1)
    constraints = {
        "a": jax.nn.sigmoid(jax.random.normal(ka, (B,), dtype=jnp.float32)),
        "b": jax.nn.sigmoid(jax.random.normal(kb, (B,), dtype=jnp.float32)),
    }
    log_s0 = jnp.log(s0)

    log_next, next_state, accepting = module(log_s0, s0, constraints)
    log_next = jax.block_until_ready(log_next)

    # ---- pure-JAX reference for the same forward ----
    trans_ref = module._transition_tensor(constraints, B)
    u_ref = jnp.einsum("bi,bij->bj", s0, trans_ref)
    t_ref = jax.nn.relu(module.temperature_logit) + module.eps
    logits_ref = jnp.log(u_ref) / t_ref
    next_ref = jax.nn.softmax(logits_ref, axis=1)
    log_next_ref = jax.nn.log_softmax(logits_ref, axis=1)
    acc_ref = jnp.sum(u_ref * module.acc_mask, axis=1)

    assert jnp.allclose(next_state, next_ref, atol=1e-6), "next_state mismatch"
    assert jnp.allclose(log_next, log_next_ref, atol=1e-5), "log_next mismatch"
    assert jnp.allclose(accepting, acc_ref, atol=1e-6), "accepting mismatch"
    assert jnp.allclose(jnp.sum(next_state, axis=1), 1.0, atol=1e-5)

    print("KERNEL_OK")
</pallas_src>

<mosaic_0001>
module attributes {stable_mosaic.version = 11 : i64} {
  func.func @_dfa_step_kernel(%arg0: i32, %arg1: memref<1xf32, #tpu.memory_space<smem>>, %arg2: memref<8x4xf32, #tpu.memory_space<vmem>>, %arg3: memref<8x16xf32, #tpu.memory_space<vmem>>, %arg4: memref<1x4xf32, #tpu.memory_space<vmem>>, %arg5: memref<8x4xf32, #tpu.memory_space<vmem>>, %arg6: memref<8x4xf32, #tpu.memory_space<vmem>>, %arg7: memref<8x1xf32, #tpu.memory_space<vmem>>) attributes {dimension_semantics = [#tpu.dimension_semantics<parallel>], iteration_bounds = array<i64: 2>, scalar_prefetch = 0 : i64, scratch_operands = 0 : i64, tpu.core_type = #tpu.core_type<tc>, window_params = [{transform_indices = @transform_0, window_bounds = array<i64: 1>}, {transform_indices = @transform_1, window_bounds = array<i64: 8, 4>}, {transform_indices = @transform_2, window_bounds = array<i64: 8, 16>}, {pipeline_mode = #tpu.pipeline_mode<synchronous>, transform_indices = @transform_3, window_bounds = array<i64: 1, 4>}, {transform_indices = @transform_4, window_bounds = array<i64: 8, 4>}, {transform_indices = @transform_5, window_bounds = array<i64: 8, 4>}, {transform_indices = @transform_6, window_bounds = array<i64: 8, 1>}]} {
    %cst = arith.constant 0.000000e+00 : f32
    %0 = vector.broadcast %cst : f32 to vector<8x4xf32>
    %c0 = arith.constant 0 : index
    %c0_0 = arith.constant 0 : index
    %1 = vector.load %arg2[%c0, %c0_0] : memref<8x4xf32, #tpu.memory_space<vmem>>, vector<8x1xf32>
    %c0_1 = arith.constant 0 : index
    %c0_2 = arith.constant 0 : index
    %2 = vector.load %arg3[%c0_1, %c0_2] : memref<8x16xf32, #tpu.memory_space<vmem>>, vector<8x4xf32>
    %3 = vector.broadcast %1 : vector<8x1xf32> to vector<8x4xf32>
    %4 = arith.mulf %3, %2 : vector<8x4xf32>
    %5 = arith.addf %0, %4 : vector<8x4xf32>
    %c0_3 = arith.constant 0 : index
    %c1 = arith.constant 1 : index
    %6 = vector.load %arg2[%c0_3, %c1] : memref<8x4xf32, #tpu.memory_space<vmem>>, vector<8x1xf32>
    %c0_4 = arith.constant 0 : index
    %c4 = arith.constant 4 : index
    %7 = vector.load %arg3[%c0_4, %c4] : memref<8x16xf32, #tpu.memory_space<vmem>>, vector<8x4xf32>
    %8 = vector.broadcast %6 : vector<8x1xf32> to vector<8x4xf32>
    %9 = arith.mulf %8, %7 : vector<8x4xf32>
    %10 = arith.addf %5, %9 : vector<8x4xf32>
    %c0_5 = arith.constant 0 : index
    %c2 = arith.constant 2 : index
    %11 = vector.load %arg2[%c0_5, %c2] : memref<8x4xf32, #tpu.memory_space<vmem>>, vector<8x1xf32>
    %c0_6 = arith.constant 0 : index
    %c8 = arith.constant 8 : index
    %12 = vector.load %arg3[%c0_6, %c8] : memref<8x16xf32, #tpu.memory_space<vmem>>, vector<8x4xf32>
    %13 = vector.broadcast %11 : vector<8x1xf32> to vector<8x4xf32>
    %14 = arith.mulf %13, %12 : vector<8x4xf32>
    %15 = arith.addf %10, %14 : vector<8x4xf32>
    %c0_7 = arith.constant 0 : index
    %c3 = arith.constant 3 : index
    %16 = vector.load %arg2[%c0_7, %c3] : memref<8x4xf32, #tpu.memory_space<vmem>>, vector<8x1xf32>
    %c0_8 = arith.constant 0 : index
    %c12 = arith.constant 12 : index
    %17 = vector.load %arg3[%c0_8, %c12] : memref<8x16xf32, #tpu.memory_space<vmem>>, vector<8x4xf32>
    %18 = vector.broadcast %16 : vector<8x1xf32> to vector<8x4xf32>
    %19 = arith.mulf %18, %17 : vector<8x4xf32>
    %20 = arith.addf %15, %19 : vector<8x4xf32>
    %c0_9 = arith.constant 0 : index
    %c0_10 = arith.constant 0 : index
    %21 = vector.load %arg4[%c0_9, %c0_10] : memref<1x4xf32, #tpu.memory_space<vmem>>, vector<1x4xf32>
    %22 = vector.broadcast %21 : vector<1x4xf32> to vector<8x4xf32>
    %23 = arith.mulf %20, %22 : vector<8x4xf32>
    %cst_11 = arith.constant dense<0.000000e+00> : vector<8xf32>
    %24 = vector.multi_reduction <add>, %23, %cst_11 [1] : vector<8x4xf32> to vector<8xf32>
    %25 = vector.shape_cast %24 : vector<8xf32> to vector<8x1xf32>
    %c0_12 = arith.constant 0 : index
    %c0_13 = arith.constant 0 : index
    %26 = vector.load %arg7[%c0_12, %c0_13] : memref<8x1xf32, #tpu.memory_space<vmem>>, vector<8x1xf32>
    tpu.vector_store %arg7[%c0_12, %c0_13], %25 {strides = array<i32>} : memref<8x1xf32, #tpu.memory_space<vmem>>, vector<8x1xf32>,
    %c0_14 = arith.constant 0 : index
    %27 = memref.load %arg1[%c0_14] : memref<1xf32, #tpu.memory_space<smem>>
    %28 = math.log %20 : vector<8x4xf32>
    %29 = vector.broadcast %27 : f32 to vector<8x4xf32>
    %30 = arith.mulf %28, %29 : vector<8x4xf32>
    %cst_15 = arith.constant dense<0xFF800000> : vector<8xf32>
    %31 = vector.multi_reduction <maximumf>, %30, %cst_15 [1] : vector<8x4xf32> to vector<8xf32>
    %32 = vector.shape_cast %31 : vector<8xf32> to vector<8x1xf32>
    %33 = vector.broadcast %32 : vector<8x1xf32> to vector<8x4xf32>
    %34 = arith.subf %30, %33 : vector<8x4xf32>
    %35 = math.exp %34 : vector<8x4xf32>
    %cst_16 = arith.constant dense<0.000000e+00> : vector<8xf32>
    %36 = vector.multi_reduction <add>, %35, %cst_16 [1] : vector<8x4xf32> to vector<8xf32>
    %37 = vector.shape_cast %36 : vector<8xf32> to vector<8x1xf32>
    %38 = vector.broadcast %37 : vector<8x1xf32> to vector<8x4xf32>
    %39 = arith.divf %35, %38 : vector<8x4xf32>
    %c0_17 = arith.constant 0 : index
    %c0_18 = arith.constant 0 : index
    %40 = vector.load %arg6[%c0_17, %c0_18] : memref<8x4xf32, #tpu.memory_space<vmem>>, vector<8x4xf32>
    tpu.vector_store %arg6[%c0_17, %c0_18], %39 {strides = array<i32>} : memref<8x4xf32, #tpu.memory_space<vmem>>, vector<8x4xf32>,
    %41 = math.log %37 : vector<8x1xf32>
    %42 = vector.broadcast %41 : vector<8x1xf32> to vector<8x4xf32>
    %43 = arith.subf %34, %42 : vector<8x4xf32>
    %c0_19 = arith.constant 0 : index
    %c0_20 = arith.constant 0 : index
    %44 = vector.load %arg5[%c0_19, %c0_20] : memref<8x4xf32, #tpu.memory_space<vmem>>, vector<8x4xf32>
    tpu.vector_store %arg5[%c0_19, %c0_20], %43 {strides = array<i32>} : memref<8x4xf32, #tpu.memory_space<vmem>>, vector<8x4xf32>,
    return
  }
  func.func @transform_0(%arg0: i32) -> i32 {
    %c0_i32 = arith.constant 0 : i32
    %c0_i32_0 = arith.constant 0 : i32
    return %c0_i32 : i32
  }
  func.func @transform_1(%arg0: i32) -> (i32, i32) {
    %c0_i32 = arith.constant 0 : i32
    %c0_i32_0 = arith.constant 0 : i32
    return %arg0, %c0_i32 : i32, i32
  }
  func.func @transform_2(%arg0: i32) -> (i32, i32) {
    %c0_i32 = arith.constant 0 : i32
    %c0_i32_0 = arith.constant 0 : i32
    return %arg0, %c0_i32 : i32, i32
  }
  func.func @transform_3(%arg0: i32) -> (i32, i32) {
    %c0_i32 = arith.constant 0 : i32
    %c0_i32_0 = arith.constant 0 : i32
    %c0_i32_1 = arith.constant 0 : i32
    return %c0_i32, %c0_i32_0 : i32, i32
  }
  func.func @transform_4(%arg0: i32) -> (i32, i32) {
    %c0_i32 = arith.constant 0 : i32
    %c0_i32_0 = arith.constant 0 : i32
    return %arg0, %c0_i32 : i32, i32
  }
  func.func @transform_5(%arg0: i32) -> (i32, i32) {
    %c0_i32 = arith.constant 0 : i32
    %c0_i32_0 = arith.constant 0 : i32
    return %arg0, %c0_i32 : i32, i32
  }
  func.func @transform_6(%arg0: i32) -> (i32, i32) {
    %c0_i32 = arith.constant 0 : i32
    %c0_i32_0 = arith.constant 0 : i32
    return %arg0, %c0_i32 : i32, i32
  }
}

</mosaic_0001>

<bundles_post_ra>
// kernel: tpu_custom_call.1
= control target key start
LH: loop header
LB: loop body
LE: loop exit
PB: predicated region body
PF: predicated region fallthrough
CT: control target
= control target key end

     0   :  { %s581_s23 = smov 0   ;;  %s622_s0 = inlined_call_operand.<no memory space> [shape: f32[1], index: 0, kind: input, shape index: {}]   ;;  %s623_s1 = inlined_call_operand.vmem [shape: f32[16,4], index: 1, kind: input, shape index: {}]   ;;  %s624_s2 = inlined_call_operand.vmem [shape: f32[16,16], index: 2, kind: input, shape index: {}]   ;;  %s625_s3 = inlined_call_operand.vmem [shape: f32[1,4], index: 3, kind: input, shape index: {}]   ;;  %s626_s4 = inlined_call_operand.vmem [shape: f32[16,4], index: 4, kind: output, shape index: {0}]   ;;  %s627_s5 = inlined_call_operand.vmem [shape: f32[16,4], index: 5, kind: output, shape index: {1}]   ;;  %s628_s6 = inlined_call_operand.vmem [shape: f32[16,1], index: 6, kind: output, shape index: {2}]  }
   0x1   :  { %12 = sst [smem:[#allocation2]] %s622_s0 }
   0x2 LB: > { %s487_s24 = sadd.s32 4294967295, %s534_s23   ;;  %p491_p0 = scmp.ge.s32.totalorder %s534_s23, 1  ;;  %s534_s23 = sphi %s581_s23, %s18_s23  }
   0x3   : > { %p226_p1 = scmp.lt.s32.totalorder %s534_s23, 3 }
   0x5   : > { %p227_p2 = pnand %p491_p0, %p226_p1 }
   0x6   : > { %p266_p3 = scmp.lt.s32.totalorder (!%p227_p2), %s487_s24, 1  ;;  %v536_v0 = vmov (!%p227_p2), 1   ;;  %v537_v1 = vmov (!%p227_p2), 3   ;;  %v538_v3 = vmov (!%p227_p2), 2   ;;  %v539_v4 = vmov (!%p227_p2), 0   ;;  %s540_s7 = smov (!%p227_p2), 124  }
   0x7   : > { %230 = sbr.rel (%p227_p2) target bundleno = 605 (0x25d), region = 36  ;;  %515 = vset.pattern.permute.xlu0 (!%p227_p2), %v536_v0  ;;  %517 = vset.pattern.permute.xlu1 (!%p227_p2), %v537_v1  ;;  %s541_s8 = smov (!%p227_p2), 116   ;;  %v497_v23 = vld [vmem:[%s625_s3] ss:$0 sm:$0xff] (!%p227_p2)  ;;  %vm333_vm0 = vcmask (!%p227_p2), 31744   ;;  %vm337_vm1 = vcmask (!%p227_p2), 7168  }
   0x8   : > { %s542_s9 = smov (!%p227_p2), 120   ;;  %s339_s10 = sld [smem:[#allocation2]] (!%p227_p2) }
   0xe   : > { %s630_s24 = smov (!%p266_p3, %s487_s24), 1  ;;  %v342_v21 = vstv %s339_s10 }
   0xf   : > { %s589_s0 = sshll.u32 %s630_s24, 3 }
  0x10   : > { %s269_s27 = scalar_lea.vmem %s623_s1, %s589_s0  ;;  %s273_s30 = scalar_lea.vmem %s624_s2, %s589_s0 }
  0x11   : > { %v286_v2 = vld [vmem:[%s269_s27] sm:$0xff]  ;;  %s285_s15 = scalar_lea.vmem %s628_s6, %s589_s0  ;;  %s281_s18 = scalar_lea.vmem %s627_s5, %s589_s0 }
  0x12   : > { %296 = vperm.xlu0 %515, %v286_v2   ;;  %316 = vperm.xlu1 %517, %v286_v2   ;;  %v287_v5 = vld [vmem:[%s273_s30] sm:$0xff]  ;;  %s277_s21 = scalar_lea.vmem %s626_s4, %s589_s0 }
  0x16   : > { %516 = vset.pattern.permute.xlu0 %v538_v3  ;;  %518 = vset.pattern.permute.xlu1 %v539_v4 }
  0x17   : > { %306 = vperm.xlu0 %516, %v286_v2   ;;  %290 = vperm.xlu1 %518, %v286_v2  }
  0x1b   : > { %519 = vset.pattern.permute.xlu0 %v537_v1 }
  0x91   : > { %v297_v6 = vpop.permute.xlu0 %296  ;;  %v317_v7 = vpop.permute.xlu1 %316 }
  0x92   : > { %v299_v8 = vmul.f32 %v297_v6, %v287_v5  ;;  %v319_v9 = vmul.f32 %v317_v7, %v287_v5 }
  0x94   : > { %301 = vrot.lane.b32.xlu1 %v299_v8, %s540_s7 }
  0x96   : > { %v307_v10 = vpop.permute.xlu0 %306  ;;  %v291_v12 = vpop.permute.xlu1 %290 }
  0x97   : > { %v309_v11 = vmul.f32 %v307_v10, %v287_v5  ;;  %v293_v13 = vmul.f32 %v291_v12, %v287_v5 }
  0x98   : > { %321 = vrot.lane.b32.xlu1 %v319_v9, %s541_s8 }
  0x99   : > { %311 = vrot.lane.b32.xlu0 %v309_v11, %s542_s9 }
 0x106   : > { %v302_v14 = vpop.permute.xlu1 %301 }
 0x107   : > { %v304_v15 = vadd.f32 %v302_v14, %v293_v13 }
 0x10a   : > { %v322_v17 = vpop.permute.xlu1 %321 }
 0x10b   : > { %v312_v16 = vpop.permute.xlu0 %311 }
 0x10c   : > { %v314_v18 = vadd.f32 %v312_v16, %v304_v15 }
 0x10e   : > { %v324_v19 = vadd.f32 %v322_v17, %v314_v18 }
 0x110   : > { %520 = vlog2.f32 %v324_v19  ;;  %v332_v26 = vmul.f32 %v497_v23, %v324_v19 }
 0x112   : > { %v334_v27 = vsel %vm333_vm0, %v332_v26, 0.0 }
 0x11a   : > { %v521_v20 = vpop.eup %520 }
 0x11b   : > { %v341_v22 = vmul.f32 0.6931472, %v521_v20 }
 0x11d   : > { %v343_v24 = vmul.f32 %v342_v21, %v341_v22 }
 0x11f   : > { %v344_v25 = vsel %vm333_vm0, %v343_v24, -inf }
 0x120   : > { %345 = vmax.xlane.f32.xlu0 %v344_v25 }
 0x124   : > { %335 = vadd.xlane.f32.xlu0 %v334_v27 }
 0x1ad   : > { %v346_v28 = vpop.xlane.xlu0 %345 }
 0x1ae   : > { %v347_v29 = vsub.f32 %v343_v24, %v346_v28 }
 0x1b0   : > { %v348_v30 = vmul.f32 1.442695, %v347_v29 }
 0x1b1   : > { %v336_v31 = vpop.xlane.xlu0 %335 }
 0x1b2   : > { %522 = vpow2.f32 %v348_v30  ;;  %338 = vst.msk [vmem:[%s285_s15] sm:$0xff] %vm337_vm1, %v336_v31 }
 0x1bc   : > { %v523_v32 = vpop.eup %522 }
 0x1bd   : > { %v350_v33 = vsel %vm333_vm0, %v523_v32, 0.0 }
 0x1be   : > { %351 = vadd.xlane.f32.xlu1 %v350_v33 }
 0x24b   : > { %v352_v34 = vpop.xlane.xlu1 %351 }
 0x24c   : > { %524 = vrcp.f32 %v352_v34 }
 0x24d   : > { %526 = vlog2.f32 %v352_v34 }
 0x256   : > { %v525_v35 = vpop.eup %524 }
 0x257   : > { %v527_v36 = vpop.eup %526  ;;  %v354_v37 = vmul.f32 %v525_v35, %v523_v32 }
 0x258   : > { %v357_v38 = vmul.f32 0.6931472, %v527_v36 }
 0x259   : > { %355 = vst.msk [vmem:[%s281_s18] sm:$0xff] %vm333_vm0, %v354_v37 }
 0x25a   : > { %v358_v39 = vsub.f32 %v347_v29, %v357_v38 }
 0x25c   : > { %359 = vst.msk [vmem:[%s277_s21] sm:$0xff] %vm333_vm0, %v358_v39 }
 0x25d PF: > { %s18_s23 = sadd.s32 1, %s534_s23  }
 0x25e   : > { %p15_p4 = scmp.ge.s32.totalorder %s18_s23, 4  }
 0x260   :  { %17 = sbr.rel (!%p15_p4) target bundleno = 2 (0x2), region = 93 }

</bundles_post_ra>
